<compile_context>
chip_gen: v6e
topology: v6e:2x2x1
jax: 0.10.0
libtpu: 0.0.40
codegen_flags: <defaults>
</compile_context>

<pallas_src>
import jax
import jax.numpy as jnp
from jax.experimental import pallas as pl
from jax.experimental.pallas import tpu as pltpu


def _cdiv(a, b):
    return -(-a // b)


def _round_up(a, m):
    return _cdiv(a, m) * m


def _vmem_limit_bytes():
    cap = 128 * 1024 * 1024
    try:
        cap = int(getattr(pltpu.get_tpu_info(), "vmem_capacity_bytes", cap))
    except Exception:
        pass
    # ~3/4 of physical VMEM: ~96 MiB on v5e/v6e (128 MiB), ~48 MiB on v7x (64 MiB)
    return min((cap * 3) // 4, 112 * 1024 * 1024)


def _combiner_kernel(img_ref, txt_ref,
                     wt_ref, bt_ref,                 # text_projection_layer
                     wi_ref, bi_ref,                 # image_projection_layer
                     wcd_t_ref, wcd_i_ref, bcd_ref,  # fused combiner|dyn1 (split halves)
                     wo_ref, bo_ref,                 # output_layer
                     wd2r_ref, bd2_ref,              # dynamic_scalar Linear #2 as [1,H] row
                     tgt_ref,                        # bf16 (100*normalize(target)).T tile [D, tbt]
                     out_ref,                        # f32 logits tile [tb, tbt]
                     pred_ref):                      # bf16 scratch [tb, D], reused across Bt tiles
    @pl.when(pl.program_id(1) == 0)
    def _compute_prediction():
        img = img_ref[...]                           # f32 [tb, D]
        txt = txt_ref[...]
        img_b = img.astype(jnp.bfloat16)             # bf16 copies feed the MXU only
        txt_b = txt.astype(jnp.bfloat16)

        # text / image projections + ReLU (dropout1/2 = identity in eval)
        tproj = jnp.maximum(
            jnp.dot(txt_b, wt_ref[...], preferred_element_type=jnp.float32)
            + bt_ref[...], 0.0)
        iproj = jnp.maximum(
            jnp.dot(img_b, wi_ref[...], preferred_element_type=jnp.float32)
            + bi_ref[...], 0.0)
        tproj_b = tproj.astype(jnp.bfloat16)
        iproj_b = iproj.astype(jnp.bfloat16)

        # fused combiner_layer | dynamic_scalar[0]:  two [tb,P] @ [P,2H] dots
        # (concat removed: raw @ W == tproj @ W[:P] + iproj @ W[P:])
        hidden = bcd_ref.shape[-1] // 2
        act = jnp.maximum(
            jnp.dot(tproj_b, wcd_t_ref[...], preferred_element_type=jnp.float32)
            + jnp.dot(iproj_b, wcd_i_ref[...], preferred_element_type=jnp.float32)
            + bcd_ref[...], 0.0)
        combined = act[:, :hidden]                   # combiner_layer + ReLU
        h = act[:, hidden:]                          # dynamic_scalar hidden + ReLU

        # dynamic_scalar tail: Linear(H->1) as VPU multiply + lane reduce, sigmoid
        dyn = jax.nn.sigmoid(
            jnp.sum(h * wd2r_ref[...], axis=-1, keepdims=True) + bd2_ref[...])   # [tb,1]

        # output_layer + gated residual  (dyn*txt + (1-dyn)*img == img + dyn*(txt-img))
        out = (jnp.dot(combined.astype(jnp.bfloat16), wo_ref[...],
                       preferred_element_type=jnp.float32)
               + bo_ref[...]
               + img + dyn * (txt - img))

        # F.normalize(dim=-1): one EUP rsqrt on the clamped sum of squares
        ss = jnp.sum(out * out, axis=-1, keepdims=True)
        pred_ref[...] = (out * jax.lax.rsqrt(jnp.maximum(ss, 1e-24))
                         ).astype(jnp.bfloat16)

    # logits tile = pred @ (100 * normalize(target)).T[:, tile j]  (bf16 MXU, f32 acc)
    out_ref[...] = jnp.dot(pred_ref[...], tgt_ref[...],
                           preferred_element_type=jnp.float32)


def prepare_targets(target_features, *, block_t=512):
    """Normalize the gallery, fold in the 100x logit scale, transpose, pad Bt
    to a lane-dense (128-multiple) tile and cast to bf16.  For retrieval the
    gallery is fixed: call this once, cache the result, and pass it to
    combiner_forward via `prepared_targets=`."""
    Bt, _ = target_features.shape
    tbt = min(block_t, _round_up(Bt, 128))
    btp = _round_up(Bt, tbt)
    tgt = target_features / jnp.maximum(
        jnp.linalg.norm(target_features, axis=-1, keepdims=True), 1e-12)
    tgt = (100.0 * tgt).T.astype(jnp.bfloat16)            # [D, Bt]
    if btp != Bt:
        tgt = jnp.pad(tgt, ((0, 0), (0, btp - Bt)))
    return tgt, Bt, tbt


def combiner_forward(image_features, text_features, target_features, params,
                     *, block_b=256, block_t=512, prepared_targets=None):
    """Full Combiner forward: combine_features + normalization + logit matmul
    in one Pallas kernel, tiled over (batch, gallery)."""
    B, D = image_features.shape

    if prepared_targets is None:
        prepared_targets = prepare_targets(target_features, block_t=block_t)
    tgt_prep, Bt, tbt = prepared_targets
    btp = tgt_prep.shape[1]

    # Batch tiling: minimize pad waste; force >= 2 tiles when possible so the
    # "parallel" axis can shard across both v7x TensorCores.
    n_b = _cdiv(B, block_b)
    if n_b < 2 and B >= 16:
        n_b = 2
    tb = _round_up(_cdiv(B, n_b), 8)
    bp = n_b * tb
    if bp != B:
        pad = ((0, bp - B), (0, 0))
        image_features = jnp.pad(image_features, pad)
        text_features = jnp.pad(text_features, pad)

    p = params
    weights = [p["wt"], p["bt"], p["wi"], p["bi"],
               p["wcd_t"], p["wcd_i"], p["bcd"],
               p["wo"], p["bo"],
               p["wd2_row"], p["bd2"]]

    def resident(arr):   # full-array block, constant index -> stays VMEM-resident
        zeros = (0,) * arr.ndim
        return pl.BlockSpec(arr.shape, lambda i, j: zeros)

    batch_spec = pl.BlockSpec((tb, D), lambda i, j: (i, 0))
    tgt_spec = pl.BlockSpec((D, tbt), lambda i, j: (0, j))
    out_spec = pl.BlockSpec((tb, tbt), lambda i, j: (i, j))

    logits = pl.pallas_call(
        _combiner_kernel,
        out_shape=jax.ShapeDtypeStruct((bp, btp), jnp.float32),
        grid=(n_b, btp // tbt),
        in_specs=[batch_spec, batch_spec]
                 + [resident(a) for a in weights]
                 + [tgt_spec],
        out_specs=out_spec,
        scratch_shapes=[pltpu.VMEM((tb, D), jnp.bfloat16)],
        compiler_params=pltpu.CompilerParams(
            dimension_semantics=("parallel", "arbitrary"),
            vmem_limit_bytes=_vmem_limit_bytes()),
    )(image_features, text_features, *weights, tgt_prep)
    return logits[:B, :Bt]


def init_params(key, clip_feature_dim, projection_dim, hidden_dim):
    """Synthetic parameters, shapes matching Combiner.__init__.
    Matmul weights stored as bf16 [in, out]; biases f32 [1, out]; the
    combiner_layer and dynamic_scalar first-layer weights are fused
    column-wise ([2P, 2H]) and pre-split into text / image halves of the
    concatenated input; the dynamic-scalar [H,1] weight is an f32 [1,H] row."""
    ks = jax.random.split(key, 12)
    D, P, H = clip_feature_dim, projection_dim, hidden_dim

    def lin(kw, kb, fan_in, fan_out):
        s = 1.0 / jnp.sqrt(fan_in)
        w = jax.random.uniform(kw, (fan_in, fan_out), jnp.float32, -s, s)
        b = jax.random.uniform(kb, (1, fan_out), jnp.float32, -s, s)
        return w, b

    wt, bt = lin(ks[0], ks[1], D, P)          # text_projection_layer
    wi, bi = lin(ks[2], ks[3], D, P)          # image_projection_layer
    wc, bc = lin(ks[4], ks[5], 2 * P, H)      # combiner_layer
    wo, bo = lin(ks[6], ks[7], H, D)          # output_layer
    wd1, bd1 = lin(ks[8], ks[9], 2 * P, H)    # dynamic_scalar Linear #1
    wd2, bd2 = lin(ks[10], ks[11], H, 1)      # dynamic_scalar Linear #2

    # column-wise fusion of combiner_layer | dynamic_scalar[0]
    wcd = jnp.concatenate([wc, wd1], axis=1)  # [2P, 2H]
    bcd = jnp.concatenate([bc, bd1], axis=1)  # [1, 2H]

    bf = lambda w: w.astype(jnp.bfloat16)
    return dict(
        wt=bf(wt), bt=bt, wi=bf(wi), bi=bi,
        wcd_t=bf(wcd[:P]), wcd_i=bf(wcd[P:]), bcd=bcd,
        wo=bf(wo), bo=bo,
        wd2_row=wd2.T,                        # [1, H] f32 (VPU lane reduction)
        bd2=bd2,                              # [1, 1] f32
    )


def _reference(image, text, target, p):
    """Pure-JAX reference mirroring the kernel's bf16-weight / f32-accumulation
    scheme (bf16 values are exact in f32, so these matmuls reproduce the MXU
    bf16 x bf16 -> f32 results up to accumulation order), including the bf16
    final logits dot."""
    f32 = lambda a: a.astype(jnp.float32)
    H = p["bcd"].shape[1] // 2
    with jax.default_matmul_precision("highest"):
        txt_b = f32(text.astype(jnp.bfloat16))
        img_b = f32(image.astype(jnp.bfloat16))
        tproj = jax.nn.relu(txt_b @ f32(p["wt"]) + p["bt"])
        iproj = jax.nn.relu(img_b @ f32(p["wi"]) + p["bi"])
        tp_b = f32(tproj.astype(jnp.bfloat16))
        ip_b = f32(iproj.astype(jnp.bfloat16))
        act = jax.nn.relu(tp_b @ f32(p["wcd_t"]) + ip_b @ f32(p["wcd_i"])
                          + p["bcd"])
        combined, h = act[:, :H], act[:, H:]
        dyn = jax.nn.sigmoid(jnp.sum(h * p["wd2_row"], axis=-1, keepdims=True)
                             + p["bd2"])
        out = (f32(combined.astype(jnp.bfloat16)) @ f32(p["wo"]) + p["bo"]
               + image + dyn * (text - image))
        pred = out * jax.lax.rsqrt(
            jnp.maximum(jnp.sum(out * out, axis=-1, keepdims=True), 1e-24))
        tgt = target / jnp.maximum(
            jnp.linalg.norm(target, axis=-1, keepdims=True), 1e-12)
        pred_b = f32(pred.astype(jnp.bfloat16))
        tgt_b = f32((100.0 * tgt).astype(jnp.bfloat16))
        return pred_b @ tgt_b.T


if __name__ == "__main__":
    # small shapes consistent with the module's forward
    B, Bt = 8, 8
    clip_feature_dim, projection_dim, hidden_dim = 64, 32, 64

    key = jax.random.PRNGKey(0)
    k_img, k_txt, k_tgt, k_par = jax.random.split(key, 4)

    image_features = jax.random.normal(k_img, (B, clip_feature_dim), jnp.float32)
    text_features = jax.random.normal(k_txt, (B, clip_feature_dim), jnp.float32)
    target_features = jax.random.normal(k_tgt, (Bt, clip_feature_dim), jnp.float32)
    params = init_params(k_par, clip_feature_dim, projection_dim, hidden_dim)

    logits = combiner_forward(image_features, text_features,
                              target_features, params)
    jax.block_until_ready(logits)

    ref = _reference(image_features, text_features, target_features, params)
    assert logits.shape == (B, Bt)
    err = float(jnp.max(jnp.abs(logits - ref)))
    assert jnp.allclose(logits, ref, atol=0.5, rtol=2e-2), err

    print("KERNEL_OK")
</pallas_src>

<mosaic_0001>
module attributes {stable_mosaic.version = 11 : i64} {
  func.func @_combiner_kernel(%arg0: i32, %arg1: i32, %arg2: memref<8x64xf32, #tpu.memory_space<vmem>>, %arg3: memref<8x64xf32, #tpu.memory_space<vmem>>, %arg4: memref<64x32xbf16, #tpu.memory_space<vmem>>, %arg5: memref<1x32xf32, #tpu.memory_space<vmem>>, %arg6: memref<64x32xbf16, #tpu.memory_space<vmem>>, %arg7: memref<1x32xf32, #tpu.memory_space<vmem>>, %arg8: memref<32x128xbf16, #tpu.memory_space<vmem>>, %arg9: memref<32x128xbf16, #tpu.memory_space<vmem>>, %arg10: memref<1x128xf32, #tpu.memory_space<vmem>>, %arg11: memref<64x64xbf16, #tpu.memory_space<vmem>>, %arg12: memref<1x64xf32, #tpu.memory_space<vmem>>, %arg13: memref<1x64xf32, #tpu.memory_space<vmem>>, %arg14: memref<1x1xf32, #tpu.memory_space<vmem>>, %arg15: memref<64x128xbf16, #tpu.memory_space<vmem>>, %arg16: memref<8x128xf32, #tpu.memory_space<vmem>>, %arg17: memref<8x64xbf16, #tpu.memory_space<vmem>>) attributes {dimension_semantics = [#tpu.dimension_semantics<parallel>, #tpu.dimension_semantics<arbitrary>], iteration_bounds = array<i64: 1, 1>, scalar_prefetch = 0 : i64, scratch_operands = 1 : i64, tpu.core_type = #tpu.core_type<tc>, window_params = [{transform_indices = @transform_0, window_bounds = array<i64: 8, 64>}, {transform_indices = @transform_1, window_bounds = array<i64: 8, 64>}, {pipeline_mode = #tpu.pipeline_mode<synchronous>, transform_indices = @transform_2, window_bounds = array<i64: 64, 32>}, {pipeline_mode = #tpu.pipeline_mode<synchronous>, transform_indices = @transform_3, window_bounds = array<i64: 1, 32>}, {pipeline_mode = #tpu.pipeline_mode<synchronous>, transform_indices = @transform_4, window_bounds = array<i64: 64, 32>}, {pipeline_mode = #tpu.pipeline_mode<synchronous>, transform_indices = @transform_5, window_bounds = array<i64: 1, 32>}, {pipeline_mode = #tpu.pipeline_mode<synchronous>, transform_indices = @transform_6, window_bounds = array<i64: 32, 128>}, {pipeline_mode = #tpu.pipeline_mode<synchronous>, transform_indices = @transform_7, window_bounds = array<i64: 32, 128>}, {pipeline_mode = #tpu.pipeline_mode<synchronous>, transform_indices = @transform_8, window_bounds = array<i64: 1, 128>}, {pipeline_mode = #tpu.pipeline_mode<synchronous>, transform_indices = @transform_9, window_bounds = array<i64: 64, 64>}, {pipeline_mode = #tpu.pipeline_mode<synchronous>, transform_indices = @transform_10, window_bounds = array<i64: 1, 64>}, {pipeline_mode = #tpu.pipeline_mode<synchronous>, transform_indices = @transform_11, window_bounds = array<i64: 1, 64>}, {pipeline_mode = #tpu.pipeline_mode<synchronous>, transform_indices = @transform_12, window_bounds = array<i64: 1, 1>}, {transform_indices = @transform_13, window_bounds = array<i64: 64, 128>}, {transform_indices = @transform_14, window_bounds = array<i64: 8, 128>}]} {
    %c0_i32 = arith.constant 0 : i32
    %0 = arith.cmpi eq, %arg1, %c0_i32 : i32
    %1 = arith.extui %0 : i1 to i32
    %c0_i32_0 = arith.constant 0 : i32
    %2 = arith.cmpi ne, %1, %c0_i32_0 : i32
    scf.if %2 {
      %c0_6 = arith.constant 0 : index
      %c0_7 = arith.constant 0 : index
      %7 = vector.load %arg2[%c0_6, %c0_7] : memref<8x64xf32, #tpu.memory_space<vmem>>, vector<8x64xf32>
      %c0_8 = arith.constant 0 : index
      %c0_9 = arith.constant 0 : index
      %8 = vector.load %arg3[%c0_8, %c0_9] : memref<8x64xf32, #tpu.memory_space<vmem>>, vector<8x64xf32>
      %9 = arith.truncf %7 : vector<8x64xf32> to vector<8x64xbf16>
      %10 = arith.truncf %8 : vector<8x64xf32> to vector<8x64xbf16>
      %c0_10 = arith.constant 0 : index
      %c0_11 = arith.constant 0 : index
      %11 = vector.load %arg4[%c0_10, %c0_11] : memref<64x32xbf16, #tpu.memory_space<vmem>>, vector<64x32xbf16>
      %cst_12 = arith.constant dense<0.000000e+00> : vector<8x32xf32>
      %12 = tpu.matmul %10, %11, %cst_12 {dimension_numbers = #tpu.dot_dimension_numbers<[1], [0], [0], [1], [0, 0, 1, 1], [], []>} : vector<8x64xbf16>, vector<64x32xbf16>, vector<8x32xf32> -> vector<8x32xf32>
      %c0_13 = arith.constant 0 : index
      %c0_14 = arith.constant 0 : index
      %13 = vector.load %arg5[%c0_13, %c0_14] : memref<1x32xf32, #tpu.memory_space<vmem>>, vector<1x32xf32>
      %14 = vector.broadcast %13 : vector<1x32xf32> to vector<8x32xf32>
      %15 = arith.addf %12, %14 : vector<8x32xf32>
      %cst_15 = arith.constant 0.000000e+00 : f32
      %16 = vector.broadcast %cst_15 : f32 to vector<8x32xf32>
      %17 = arith.maximumf %15, %16 : vector<8x32xf32>
      %c0_16 = arith.constant 0 : index
      %c0_17 = arith.constant 0 : index
      %18 = vector.load %arg6[%c0_16, %c0_17] : memref<64x32xbf16, #tpu.memory_space<vmem>>, vector<64x32xbf16>
      %cst_18 = arith.constant dense<0.000000e+00> : vector<8x32xf32>
      %19 = tpu.matmul %9, %18, %cst_18 {dimension_numbers = #tpu.dot_dimension_numbers<[1], [0], [0], [1], [0, 0, 1, 1], [], []>} : vector<8x64xbf16>, vector<64x32xbf16>, vector<8x32xf32> -> vector<8x32xf32>
      %c0_19 = arith.constant 0 : index
      %c0_20 = arith.constant 0 : index
      %20 = vector.load %arg7[%c0_19, %c0_20] : memref<1x32xf32, #tpu.memory_space<vmem>>, vector<1x32xf32>
      %21 = vector.broadcast %20 : vector<1x32xf32> to vector<8x32xf32>
      %22 = arith.addf %19, %21 : vector<8x32xf32>
      %cst_21 = arith.constant 0.000000e+00 : f32
      %23 = vector.broadcast %cst_21 : f32 to vector<8x32xf32>
      %24 = arith.maximumf %22, %23 : vector<8x32xf32>
      %25 = arith.truncf %17 : vector<8x32xf32> to vector<8x32xbf16>
      %26 = arith.truncf %24 : vector<8x32xf32> to vector<8x32xbf16>
      %c0_22 = arith.constant 0 : index
      %c0_23 = arith.constant 0 : index
      %27 = vector.load %arg8[%c0_22, %c0_23] : memref<32x128xbf16, #tpu.memory_space<vmem>>, vector<32x128xbf16>
      %cst_24 = arith.constant dense<0.000000e+00> : vector<8x128xf32>
      %28 = tpu.matmul %25, %27, %cst_24 {dimension_numbers = #tpu.dot_dimension_numbers<[1], [0], [0], [1], [0, 0, 1, 1], [], []>} : vector<8x32xbf16>, vector<32x128xbf16>, vector<8x128xf32> -> vector<8x128xf32>
      %c0_25 = arith.constant 0 : index
      %c0_26 = arith.constant 0 : index
      %29 = vector.load %arg9[%c0_25, %c0_26] : memref<32x128xbf16, #tpu.memory_space<vmem>>, vector<32x128xbf16>
      %cst_27 = arith.constant dense<0.000000e+00> : vector<8x128xf32>
      %30 = tpu.matmul %26, %29, %cst_27 {dimension_numbers = #tpu.dot_dimension_numbers<[1], [0], [0], [1], [0, 0, 1, 1], [], []>} : vector<8x32xbf16>, vector<32x128xbf16>, vector<8x128xf32> -> vector<8x128xf32>
      %31 = arith.addf %28, %30 : vector<8x128xf32>
      %c0_28 = arith.constant 0 : index
      %c0_29 = arith.constant 0 : index
      %32 = vector.load %arg10[%c0_28, %c0_29] : memref<1x128xf32, #tpu.memory_space<vmem>>, vector<1x128xf32>
      %33 = vector.broadcast %32 : vector<1x128xf32> to vector<8x128xf32>
      %34 = arith.addf %31, %33 : vector<8x128xf32>
      %cst_30 = arith.constant 0.000000e+00 : f32
      %35 = vector.broadcast %cst_30 : f32 to vector<8x128xf32>
      %36 = arith.maximumf %34, %35 : vector<8x128xf32>
      %37 = vector.extract_strided_slice %36 {offsets = [0, 0], sizes = [8, 64], strides = [1, 1]} : vector<8x128xf32> to vector<8x64xf32>
      %38 = vector.extract_strided_slice %36 {offsets = [0, 64], sizes = [8, 64], strides = [1, 1]} : vector<8x128xf32> to vector<8x64xf32>
      %c0_31 = arith.constant 0 : index
      %c0_32 = arith.constant 0 : index
      %39 = vector.load %arg13[%c0_31, %c0_32] : memref<1x64xf32, #tpu.memory_space<vmem>>, vector<1x64xf32>
      %40 = vector.broadcast %39 : vector<1x64xf32> to vector<8x64xf32>
      %41 = arith.mulf %38, %40 : vector<8x64xf32>
      %cst_33 = arith.constant dense<0.000000e+00> : vector<8xf32>
      %42 = vector.multi_reduction <add>, %41, %cst_33 [1] : vector<8x64xf32> to vector<8xf32>
      %43 = vector.shape_cast %42 : vector<8xf32> to vector<8x1xf32>
      %c0_34 = arith.constant 0 : index
      %c0_35 = arith.constant 0 : index
      %44 = vector.load %arg14[%c0_34, %c0_35] : memref<1x1xf32, #tpu.memory_space<vmem>>, vector<1x1xf32>
      %45 = vector.broadcast %44 : vector<1x1xf32> to vector<8x1xf32>
      %46 = arith.addf %43, %45 : vector<8x1xf32>
      %47 = arith.negf %46 : vector<8x1xf32>
      %48 = math.exp %47 : vector<8x1xf32>
      %cst_36 = arith.constant 1.000000e+00 : f32
      %49 = vector.broadcast %cst_36 : f32 to vector<8x1xf32>
      %50 = arith.addf %49, %48 : vector<8x1xf32>
      %51 = arith.divf %49, %50 : vector<8x1xf32>
      %52 = arith.truncf %37 : vector<8x64xf32> to vector<8x64xbf16>
      %c0_37 = arith.constant 0 : index
      %c0_38 = arith.constant 0 : index
      %53 = vector.load %arg11[%c0_37, %c0_38] : memref<64x64xbf16, #tpu.memory_space<vmem>>, vector<64x64xbf16>
      %cst_39 = arith.constant dense<0.000000e+00> : vector<8x64xf32>
      %54 = tpu.matmul %52, %53, %cst_39 {dimension_numbers = #tpu.dot_dimension_numbers<[1], [0], [0], [1], [0, 0, 1, 1], [], []>} : vector<8x64xbf16>, vector<64x64xbf16>, vector<8x64xf32> -> vector<8x64xf32>
      %c0_40 = arith.constant 0 : index
      %c0_41 = arith.constant 0 : index
      %55 = vector.load %arg12[%c0_40, %c0_41] : memref<1x64xf32, #tpu.memory_space<vmem>>, vector<1x64xf32>
      %56 = vector.broadcast %55 : vector<1x64xf32> to vector<8x64xf32>
      %57 = arith.addf %54, %56 : vector<8x64xf32>
      %58 = arith.addf %57, %7 : vector<8x64xf32>
      %59 = arith.subf %8, %7 : vector<8x64xf32>
      %60 = vector.broadcast %51 : vector<8x1xf32> to vector<8x64xf32>
      %61 = arith.mulf %60, %59 : vector<8x64xf32>
      %62 = arith.addf %58, %61 : vector<8x64xf32>
      %63 = arith.mulf %62, %62 : vector<8x64xf32>
      %cst_42 = arith.constant dense<0.000000e+00> : vector<8xf32>
      %64 = vector.multi_reduction <add>, %63, %cst_42 [1] : vector<8x64xf32> to vector<8xf32>
      %65 = vector.shape_cast %64 : vector<8xf32> to vector<8x1xf32>
      %cst_43 = arith.constant 1.000000e-24 : f32
      %66 = vector.broadcast %cst_43 : f32 to vector<8x1xf32>
      %67 = arith.maximumf %65, %66 : vector<8x1xf32>
      %68 = math.rsqrt %67 : vector<8x1xf32>
      %69 = vector.broadcast %68 : vector<8x1xf32> to vector<8x64xf32>
      %70 = arith.mulf %62, %69 : vector<8x64xf32>
      %71 = arith.truncf %70 : vector<8x64xf32> to vector<8x64xbf16>
      %c0_44 = arith.constant 0 : index
      %c0_45 = arith.constant 0 : index
      %72 = vector.load %arg17[%c0_44, %c0_45] : memref<8x64xbf16, #tpu.memory_space<vmem>>, vector<8x64xbf16>
      tpu.vector_store %arg17[%c0_44, %c0_45], %71 {strides = array<i32>} : memref<8x64xbf16, #tpu.memory_space<vmem>>, vector<8x64xbf16>,
    } else {
    }
    %c0 = arith.constant 0 : index
    %c0_1 = arith.constant 0 : index
    %3 = vector.load %arg17[%c0, %c0_1] : memref<8x64xbf16, #tpu.memory_space<vmem>>, vector<8x64xbf16>
    %c0_2 = arith.constant 0 : index
    %c0_3 = arith.constant 0 : index
    %4 = vector.load %arg15[%c0_2, %c0_3] : memref<64x128xbf16, #tpu.memory_space<vmem>>, vector<64x128xbf16>
    %cst = arith.constant dense<0.000000e+00> : vector<8x128xf32>
    %5 = tpu.matmul %3, %4, %cst {dimension_numbers = #tpu.dot_dimension_numbers<[1], [0], [0], [1], [0, 0, 1, 1], [], []>} : vector<8x64xbf16>, vector<64x128xbf16>, vector<8x128xf32> -> vector<8x128xf32>
    %c0_4 = arith.constant 0 : index
    %c0_5 = arith.constant 0 : index
    %6 = vector.load %arg16[%c0_4, %c0_5] : memref<8x128xf32, #tpu.memory_space<vmem>>, vector<8x128xf32>
    tpu.vector_store %arg16[%c0_4, %c0_5], %5 {strides = array<i32>} : memref<8x128xf32, #tpu.memory_space<vmem>>, vector<8x128xf32>,
    return
  }
  func.func @transform_0(%arg0: i32, %arg1: i32) -> (i32, i32) {
    %c0_i32 = arith.constant 0 : i32
    %c0_i32_0 = arith.constant 0 : i32
    return %arg0, %c0_i32 : i32, i32
  }
  func.func @transform_1(%arg0: i32, %arg1: i32) -> (i32, i32) {
    %c0_i32 = arith.constant 0 : i32
    %c0_i32_0 = arith.constant 0 : i32
    return %arg0, %c0_i32 : i32, i32
  }
  func.func @transform_2(%arg0: i32, %arg1: i32) -> (i32, i32) {
    %c0_i32 = arith.constant 0 : i32
    %c0_i32_0 = arith.constant 0 : i32
    %c0_i32_1 = arith.constant 0 : i32
    return %c0_i32, %c0_i32_0 : i32, i32
  }
  func.func @transform_3(%arg0: i32, %arg1: i32) -> (i32, i32) {
    %c0_i32 = arith.constant 0 : i32
    %c0_i32_0 = arith.constant 0 : i32
    %c0_i32_1 = arith.constant 0 : i32
    return %c0_i32, %c0_i32_0 : i32, i32
  }
  func.func @transform_4(%arg0: i32, %arg1: i32) -> (i32, i32) {
    %c0_i32 = arith.constant 0 : i32
    %c0_i32_0 = arith.constant 0 : i32
    %c0_i32_1 = arith.constant 0 : i32
    return %c0_i32, %c0_i32_0 : i32, i32
  }
  func.func @transform_5(%arg0: i32, %arg1: i32) -> (i32, i32) {
    %c0_i32 = arith.constant 0 : i32
    %c0_i32_0 = arith.constant 0 : i32
    %c0_i32_1 = arith.constant 0 : i32
    return %c0_i32, %c0_i32_0 : i32, i32
  }
  func.func @transform_6(%arg0: i32, %arg1: i32) -> (i32, i32) {
    %c0_i32 = arith.constant 0 : i32
    %c0_i32_0 = arith.constant 0 : i32
    %c0_i32_1 = arith.constant 0 : i32
    return %c0_i32, %c0_i32_0 : i32, i32
  }
  func.func @transform_7(%arg0: i32, %arg1: i32) -> (i32, i32) {
    %c0_i32 = arith.constant 0 : i32
    %c0_i32_0 = arith.constant 0 : i32
    %c0_i32_1 = arith.constant 0 : i32
    return %c0_i32, %c0_i32_0 : i32, i32
  }
  func.func @transform_8(%arg0: i32, %arg1: i32) -> (i32, i32) {
    %c0_i32 = arith.constant 0 : i32
    %c0_i32_0 = arith.constant 0 : i32
    %c0_i32_1 = arith.constant 0 : i32
    return %c0_i32, %c0_i32_0 : i32, i32
  }
  func.func @transform_9(%arg0: i32, %arg1: i32) -> (i32, i32) {
    %c0_i32 = arith.constant 0 : i32
    %c0_i32_0 = arith.constant 0 : i32
    %c0_i32_1 = arith.constant 0 : i32
    return %c0_i32, %c0_i32_0 : i32, i32
  }
  func.func @transform_10(%arg0: i32, %arg1: i32) -> (i32, i32) {
    %c0_i32 = arith.constant 0 : i32
    %c0_i32_0 = arith.constant 0 : i32
    %c0_i32_1 = arith.constant 0 : i32
    return %c0_i32, %c0_i32_0 : i32, i32
  }
  func.func @transform_11(%arg0: i32, %arg1: i32) -> (i32, i32) {
    %c0_i32 = arith.constant 0 : i32
    %c0_i32_0 = arith.constant 0 : i32
    %c0_i32_1 = arith.constant 0 : i32
    return %c0_i32, %c0_i32_0 : i32, i32
  }
  func.func @transform_12(%arg0: i32, %arg1: i32) -> (i32, i32) {
    %c0_i32 = arith.constant 0 : i32
    %c0_i32_0 = arith.constant 0 : i32
    %c0_i32_1 = arith.constant 0 : i32
    return %c0_i32, %c0_i32_0 : i32, i32
  }
  func.func @transform_13(%arg0: i32, %arg1: i32) -> (i32, i32) {
    %c0_i32 = arith.constant 0 : i32
    %c0_i32_0 = arith.constant 0 : i32
    return %c0_i32, %arg1 : i32, i32
  }
  func.func @transform_14(%arg0: i32, %arg1: i32) -> (i32, i32) {
    %c0_i32 = arith.constant 0 : i32
    return %arg0, %arg1 : i32, i32
  }
}

</mosaic_0001>

<bundles_post_ra>
// kernel: tpu_custom_call.1
= control target key start
LH: loop header
LB: loop body
LE: loop exit
PB: predicated region body
PF: predicated region fallthrough
CT: control target
= control target key end

     0   :  { %s1051_s0 = inlined_call_operand.hbm [shape: f32[8,64], index: 0, kind: input, shape index: {}]   ;;  %s1052_s1 = inlined_call_operand.hbm [shape: f32[8,64], index: 1, kind: input, shape index: {}]   ;;  %s1053_s2 = inlined_call_operand.vmem [shape: bf16[64,32], index: 2, kind: input, shape index: {}]   ;;  %s1054_s3 = inlined_call_operand.vmem [shape: f32[1,32], index: 3, kind: input, shape index: {}]   ;;  %s1055_s4 = inlined_call_operand.vmem [shape: bf16[64,32], index: 4, kind: input, shape index: {}]   ;;  %s1056_s5 = inlined_call_operand.vmem [shape: f32[1,32], index: 5, kind: input, shape index: {}]   ;;  %s1057_s6 = inlined_call_operand.vmem [shape: bf16[32,128], index: 6, kind: input, shape index: {}]   ;;  %s1058_s7 = inlined_call_operand.vmem [shape: bf16[32,128], index: 7, kind: input, shape index: {}]   ;;  %s1059_s8 = inlined_call_operand.vmem [shape: f32[1,128], index: 8, kind: input, shape index: {}]   ;;  %s1060_s9 = inlined_call_operand.vmem [shape: bf16[64,64], index: 9, kind: input, shape index: {}]   ;;  %s1061_s10 = inlined_call_operand.vmem [shape: f32[1,64], index: 10, kind: input, shape index: {}]   ;;  %s1062_s11 = inlined_call_operand.vmem [shape: f32[1,64], index: 11, kind: input, shape index: {}]   ;;  %s1063_s12 = inlined_call_operand.<no memory space> [shape: f32[1,1], index: 12, kind: input, shape index: {}]   ;;  %s1064_s13 = inlined_call_operand.vmem [shape: bf16[64,128], index: 13, kind: input, shape index: {}]   ;;  %s1065_s14 = inlined_call_operand.hbm [shape: f32[8,128], index: 14, kind: output, shape index: {}]  }
   0x1   :  { %v19_v0 = vstv %s1063_s12 }
   0x2   :  { %20 = vst [vmem:[#allocation3] sm:$0x1] %v19_v0 }
   0x3   :  { %21 = vsyncpa [#allocation5], 0 }
   0x4   :  { %22 = vsyncpa [#allocation8], 0 }
   0x5   :  { %23 = vsyncpa [#allocation6], 0  ;;  %s831_s15 = smov [#allocation4]   ;;  %s832_s17 = smov [#allocation7]  }
   0x6   :  { %s30_s16 = sshll.u32 %s831_s15, 4  ;;  %s40_s18 = sshll.u32 %s832_s17, 4  ;;  %s31_s16 = int_to_ptr.vmem [resolvable:$true] %s30_s16  ;;  %s41_s18 = int_to_ptr.vmem [resolvable:$true] %s40_s18 }
   0x7   :  { %s773_s19 = scalar_lea.vmem %s31_s16, 128  ;;  %p778_p1 = scmp.lt.s32.totalorder %s31_s16, %s31_s16 }
   0x8   :  { %p774_p0 = scmp.ne.s32.totalorder %s31_s16, %s773_s19  ;;  %p779_p2 = scmp.lt.s32.totalorder %s773_s19, %s773_s19 }
   0xa   :  { %p780_p3 = por %p779_p2, %p778_p1 }
   0xc   :  { %p781_p4 = pnand %p780_p3, %p774_p0 }
   0xe   :  { %784 = shalt.err (!%p781_p4)
}
   0xf   :  { %33 = dma.hbm_to_vmem [thread:$0]  %s1051_s0, 128, %s31_s16, [#allocation5]  }
  0x10   :  { %s793_s12 = scalar_lea.vmem %s41_s18, 128  ;;  %p798_p6 = scmp.lt.s32.totalorder %s41_s18, %s41_s18 }
  0x11   :  { %p794_p5 = scmp.ne.s32.totalorder %s41_s18, %s793_s12  ;;  %p799_p7 = scmp.lt.s32.totalorder %s793_s12, %s793_s12 }
  0x13   :  { %p800_p8 = por %p799_p7, %p798_p6 }
  0x15   :  { %p801_p9 = pnand %p800_p8, %p794_p5 }
  0x17   :  { %804 = shalt.err (!%p801_p9)
}
  0x18   :  { %43 = dma.hbm_to_vmem [thread:$0]  %s1052_s1, 128, %s41_s18, [#allocation8]  }
  0x19   :  { %825 = dma.done.wait [#allocation5], 128  }
  0x1a   :  { %826 = vsyncadd [#allocation5], 4294967168 }
  0x1b   :  { %827 = dma.done.wait [#allocation8], 128  }
  0x1c   :  { %828 = vsyncadd [#allocation8], 4294967168  ;;  %v833_v1 = vmov 0.0   ;;  %vm834_vm0 = vmmov 0   ;;  %v739_v2 = vld [vmem:[%s1053_s2 + $0x18] sm:$0xff]   ;;  %v741_v4 = vld [vmem:[%s1053_s2 + $0x10] sm:$0xff]  }
  0x1d   :  { %666 = vmatprep.subr.bf16.mxu0 %v833_v1  ;;  %678 = vmatprep.subr.bf16.mxu1 %v833_v1  ;;  %v740_v3 = vld [vmem:[%s1055_s4 + $0x18] sm:$0xff]   ;;  %v742_v5 = vld [vmem:[%s1055_s4 + $0x10] sm:$0xff]   ;;  %v743_v6 = vld [vmem:[%s1053_s2 + $0x8] sm:$0xff]   ;;  %vm122_vm1 = vcmask 523264   ;;  %s835_s27 = smov 64   ;;  %vm272_vm2 = vcmask 261120  }
  0x1e   :  { %674 = vmatprep.mubr.msk.bf16.mxu0 %vm834_vm0, %v833_v1  ;;  %686 = vmatprep.mubr.msk.bf16.mxu1 %vm834_vm0, %v833_v1  ;;  %v744_v7 = vld [vmem:[%s1055_s4 + $0x8] sm:$0xff]   ;;  %v745_v8 = vld [vmem:[%s1053_s2] sm:$0xff]   ;;  %v751_v32 = vld [vmem:[%s1060_s9 + $0x18] sm:$0xff]   ;;  %v836_v56 = vmov 0   ;;  %vm511_vm3 = vcmask 519168   ;;  %s837_s24 = smov [#allocation9]  }
  0x1f   :  { %667 = vmatpush3.bf16.msra.mxu0 %v739_v2  ;;  %679 = vmatpush3.bf16.msra.mxu1 %v740_v3  ;;  %v746_v9 = vld [vmem:[%s1055_s4] sm:$0xff]   ;;  %v956_v10 = vld [vmem:[#allocation7] sm:$0xff]  ;;  %s597_s1 = sshll.u32 %s837_s24, 4  ;;  %s598_s1 = int_to_ptr.vmem [resolvable:$true] %s597_s1 }
  0x20   :  { %668 = vmatprep.subr.bf16.mxu0 %v833_v1  ;;  %680 = vmatprep.subr.bf16.mxu1 %v833_v1  ;;  %v958_v11 = vld [vmem:[#allocation4] sm:$0xff]  ;;  %v82_v13 = vpack.c.bf16 %v956_v10, %v956_v10  ;;  %v626_v18 = vld [vmem:[%s1062_s11] ss:$0 sm:$0xff]  ;;  %v752_v36 = vld [vmem:[%s1060_s9 + $0x10] sm:$0xff]   ;;  %p810_p11 = scmp.lt.s32.totalorder %s598_s1, %s598_s1 }
  0x21   :  { %v747_v12 = vld [vmem:[%s1058_s7 + $0x8] sm:$0xff]   ;;  %v81_v15 = vpack.c.bf16 %v958_v11, %v958_v11  ;;  %v749_v16 = vld [vmem:[%s1058_s7] sm:$0xff]   ;;  %386 = vrot.lane.b32.xlu0 %v626_v18, %s835_s27  ;;  %737 = vset.pattern.permute.xlu1 %v836_v56 }
  0x22   :  { %v748_v14 = vld [vmem:[%s1057_s6 + $0x8] sm:$0xff]   ;;  %v750_v17 = vld [vmem:[%s1057_s6] sm:$0xff]   ;;  %738 = vset.pattern.permute.xlu0 %v836_v56 }
  0x23   :  { %669 = vmatpush3.bf16.msra.mxu0 %v741_v4  ;;  %681 = vmatpush3.bf16.msra.mxu1 %v742_v5  ;;  %v607_v19 = vld [vmem:[%s1054_s3] ss:$0 sm:$0xff]  ;;  %v753_v37 = vld [vmem:[%s1060_s9 + $0x8] sm:$0xff]   ;;  %v627_v61 = vld [vmem:[#allocation3] ss:$0 sm:$0xff] }
  0x24   :  { %670 = vmatprep.subr.bf16.mxu0 %v833_v1  ;;  %682 = vmatprep.subr.bf16.mxu1 %v833_v1  ;;  %v613_v20 = vld [vmem:[%s1056_s5] ss:$0 sm:$0xff] }
  0x25   :  { %v754_v38 = vld [vmem:[%s1060_s9] sm:$0xff]  }
  0x26   :  { %v625_v41 = vld [vmem:[%s1059_s8] ss:$0 sm:$0xff] }
  0x27   :  { %671 = vmatpush3.bf16.msra.mxu0 %v743_v6  ;;  %683 = vmatpush3.bf16.msra.mxu1 %v744_v7  ;;  %v629_v5 = vld [vmem:[%s1061_s10] ss:$0 sm:$0xff]  ;;  %v495_v7 = vsub.f32 %v956_v10, %v958_v11  ;;  %v756_v10 = vld [vmem:[%s1064_s13 + $0x10] sm:$0xff]  }
  0x28   :  { %672 = vmatprep.subr.bf16.mxu0 %v833_v1  ;;  %684 = vmatprep.subr.bf16.mxu1 %v833_v1 }
  0x2b   :  { %673 = vmatpush3.bf16.msra.mxu0 %v745_v8  ;;  %685 = vmatpush3.bf16.msra.mxu1 %v746_v9 }
  0x2c   :  { %690 = vmatprep.subr.bf16.mxu0 %v833_v1  ;;  %698 = vmatprep.subr.bf16.mxu1 %v833_v1 }
  0x2e   :  { %675 = vmatmul.mubr.msk.bf16.vlgmr.msra.gmra.mxu0 %vm122_vm1, %v82_v13  ;;  %687 = vmatmul.mubr.msk.bf16.vlgmr.msra.gmra.mxu1 %vm122_vm1, %v81_v15 }
  0x2f   :  { %691 = vmatpush3.bf16.msra.mxu0 %v747_v12  ;;  %699 = vmatpush3.bf16.msra.mxu1 %v748_v14 }
  0x30   :  { %692 = vmatprep.subr.bf16.mxu0 %v833_v1  ;;  %700 = vmatprep.subr.bf16.mxu1 %v833_v1 }
  0x31   :  { %694 = vmatprep.mubr.msk.bf16.mxu0 %vm834_vm0, %v833_v1  ;;  %702 = vmatprep.mubr.msk.bf16.mxu1 %vm834_vm0, %v833_v1 }
  0x33   :  { %693 = vmatpush3.bf16.msra.mxu0 %v749_v16  ;;  %701 = vmatpush3.bf16.msra.mxu1 %v750_v17  ;;  %v755_v16 = vld [vmem:[%s1064_s13 + $0x18] sm:$0xff]   ;;  %v758_v17 = vld [vmem:[%s1064_s13] sm:$0xff]  }
  0x34   :  { %706 = vmatprep.subr.bf16.mxu0 %v833_v1  ;;  %718 = vmatprep.subr.bf16.mxu1 %v833_v1 }
  0x93   :  { %v387_v48 = vpop.permute.xlu0 %386 }
  0xee   :  { %v160_v21 = vpop.f32.mrf.mxu0  ;;  %v243_v23 = vpop.f32.mrf.mxu1 }
  0xef   :  { %v161_v22 = vadd.f32 %v607_v19, %v160_v21  ;;  %v244_v24 = vadd.f32 %v613_v20, %v243_v23 }
  0xf0   :  { %v676_v25 = vpop.f32.mrf.mxu0  ;;  %v688_v27 = vpop.f32.mrf.mxu1 }
  0xf1   :  { %v166_v26 = vmax.f32 %v161_v22, 0.0  ;;  %v249_v28 = vmax.f32 %v244_v24, 0.0 }
  0xf2   :  { %v163_v29 = vpop.f32.mrf.mxu0  ;;  %v246_v31 = vpop.f32.mrf.mxu1 }
  0xf3   :  { %v250_v30 = vpack.c.bf16 %v166_v26, %v166_v26  ;;  %v251_v33 = vpack.c.bf16 %v249_v28, %v249_v28 }
  0xf4   :  { %v677_v34 = vpop.f32.mrf.mxu0  ;;  %v689_v35 = vpop.f32.mrf.mxu1 }
  0xf5   :  { %703 = vmatmul.mubr.msk.bf16.vlgmr.msra.gmra.mxu1 %vm272_vm2, %v250_v30  ;;  %695 = vmatmul.mubr.msk.bf16.vlgmr.msra.gmra.mxu0 %vm272_vm2, %v251_v33 }
  0xf6   :  { %726 = vmatprep.mubr.msk.bf16.mxu1 %vm834_vm0, %v833_v1  ;;  %707 = vmatpush3.bf16.msra.mxu0 %v751_v32 }
  0xf7   :  { %714 = vmatprep.mubr.msk.bf16.mxu0 %vm834_vm0, %v833_v1  ;;  %708 = vmatprep.subr.bf16.mxu0 %v833_v1 }
  0xf8   :  { %719 = vmatpush3.bf16.msra.mxu1 %v755_v16 }
  0xf9   :  { %720 = vmatprep.subr.bf16.mxu1 %v833_v1 }
  0xfa   :  { %709 = vmatpush3.bf16.msra.mxu0 %v752_v36 }
  0xfb   :  { %710 = vmatprep.subr.bf16.mxu0 %v833_v1 }
  0xfc   :  { %721 = vmatpush3.bf16.msra.mxu1 %v756_v10 }
  0xfd   :  { %722 = vmatprep.subr.bf16.mxu1 %v833_v1 }
  0xfe   :  { %711 = vmatpush3.bf16.msra.mxu0 %v753_v37 }
  0xff   :  { %712 = vmatprep.subr.bf16.mxu0 %v833_v1 }
 0x102   :  { %713 = vmatpush3.bf16.msra.mxu0 %v754_v38 }
 0x1b5   :  { %v365_v39 = vpop.f32.mrf.mxu1  ;;  %v310_v40 = vpop.f32.mrf.mxu0 }
 0x1b6   :  { %v366_v42 = vadd.f32 %v365_v39, %v310_v40 }
 0x1b7   :  { %v704_v43 = vpop.f32.mrf.mxu1  ;;  %v696_v44 = vpop.f32.mrf.mxu0 }
 0x1b8   :  { %v378_v45 = vadd.f32 %v625_v41, %v366_v42 }
 0x1b9   :  { %v368_v46 = vpop.f32.mrf.mxu1  ;;  %v313_v47 = vpop.f32.mrf.mxu0 }
 0x1ba   :  { %v379_v49 = vmax.f32 %v378_v45, 0.0 }
 0x1bb   :  { %v705_v50 = vpop.f32.mrf.mxu1  ;;  %v697_v51 = vpop.f32.mrf.mxu0 }
 0x1bc   :  { %v389_v52 = vmul.f32 %v387_v48, %v379_v49  ;;  %v411_v53 = vpack.c.bf16 %v379_v49, %v379_v49 }
 0x1be   :  { %715 = vmatmul.mubr.msk.bf16.vlgmr.msra.gmra.mxu0 %vm122_vm1, %v411_v53  ;;  %391 = vrot.lane.b32.xlu0 %v389_v52, %s835_s27 }
 0x230   :  { %v392_v54 = vpop.permute.xlu0 %391 }
 0x231   :  { %v394_v55 = vsel %vm122_vm1, %v392_v54, 0.0 }
 0x232   :  { %395 = vadd.xlane.f32.xlu1 %v394_v55 }
 0x27e   :  { %v488_v57 = vpop.f32.mrf.mxu0 }
 0x27f   :  { %v489_v6 = vadd.f32 %v629_v5, %v488_v57 }
 0x280   :  { %v716_v58 = vpop.f32.mrf.mxu0 }
 0x281   :  { %v494_v9 = vadd.f32 %v489_v6, %v958_v11  ;;  %v757_v11 = vld [vmem:[%s1064_s13 + $0x8] sm:$0xff]   ;;  %s805_s13 = scalar_lea.vmem %s598_s1, 128 }
 0x282   :  { %v491_v59 = vpop.f32.mrf.mxu0  ;;  %723 = vmatpush3.bf16.msra.mxu1 %v757_v11  ;;  %p806_p10 = scmp.ne.s32.totalorder %s598_s1, %s805_s13  ;;  %p811_p12 = scmp.lt.s32.totalorder %s805_s13, %s805_s13 }
 0x283   :  { %724 = vmatprep.subr.bf16.mxu1 %v833_v1 }
 0x284   :  { %v717_v60 = vpop.f32.mrf.mxu0  ;;  %p812_p13 = por %p811_p12, %p810_p11 }
 0x286   :  { %725 = vmatpush3.bf16.msra.mxu1 %v758_v17  ;;  %p813_p0 = pnand %p812_p13, %p806_p10 }
 0x2bb   :  { %v396_v62 = vpop.xlane.xlu1 %395 }
 0x2bc   :  { %v404_v63 = vadd.f32 %v627_v61, %v396_v62 }
 0x2be   :  { %v628_v0 = vmul.f32 -1.442695, %v404_v63 }
 0x2c0   :  { %759 = vpow2.f32 %v628_v0 }
 0x2cd   :  { %v760_v2 = vpop.eup %759 }
 0x2ce   :  { %v408_v3 = vadd.f32 1.0, %v760_v2 }
 0x2d0   :  { %761 = vrcp.f32 %v408_v3 }
 0x2dd   :  { %v762_v4 = vpop.eup %761 }
 0x2de   :  { %498 = vperm.xlu1 %737, %v762_v4  }
 0x359   :  { %v499_v8 = vpop.permute.xlu1 %498 }
 0x35a   :  { %v501_v12 = vmul.f32 %v499_v8, %v495_v7 }
 0x35c   :  { %v502_v13 = vadd.f32 %v501_v12, %v494_v9 }
 0x35e   :  { %v503_v14 = vmul.f32 %v502_v13, %v502_v13 }
 0x360   :  { %v504_v15 = vsel %vm122_vm1, %v503_v14, 0.0 }
 0x361   :  { %505 = vadd.xlane.f32.xlu0 %v504_v15 }
 0x3ea   :  { %v506_v18 = vpop.xlane.xlu0 %505 }
 0x3eb   :  { %v507_v19 = vmax.f32 %v506_v18, 1e-24 }
 0x3ed   :  { %763 = vrsqrt.f32 %v507_v19 }
 0x3fa   :  { %v764_v20 = vpop.eup %763 }
 0x3fb   :  { %v509_v21 = vmul.f32 %v764_v20, %v502_v13 }
 0x3fd   :  { %v510_v22 = vpack.c.bf16 %v509_v21, %v509_v21 }
 0x3ff   :  { %512 = vst.msk [vmem:[#allocation2] sm:$0xf] %vm511_vm3, %v510_v22 }
 0x406   :  { %v513_v23 = vld [vmem:[#allocation2] sm:$0xf] }
 0x407   :  { %727 = vmatmul.mubr.msk.bf16.vlgmr.msra.gmra.mxu1 %vm122_vm1, %v513_v23 }
 0x4c7   :  { %v584_v24 = vpop.f32.mrf.mxu1 }
 0x4c8   :  { %590 = vst [vmem:[#allocation9] sm:$0xff] %v584_v24 }
 0x4c9   :  { %v728_v25 = vpop.f32.mrf.mxu1 }
 0x4ca   :  { %816 = shalt.err (!%p813_p0)
}
 0x4cb   :  { %600 = dma.vmem_to_hbm [thread:$0]  %s598_s1, 128, %s1065_s14, [#allocation6]   ;;  %v587_v1 = vpop.f32.mrf.mxu1 }
 0x4cd   :  { %v729_v26 = vpop.f32.mrf.mxu1 }
 0x4ce   :  { %829 = dma.done.wait [#allocation6], 128  }
 0x4cf   :  { %830 = vsyncadd [#allocation6], 4294967168 }
 0x4d0   :  { %604 = vsyncpa [#allocation5], 1 }
 0x4d1   :  { %605 = vsyncpa [#allocation8], 1 }
 0x4d2   :  { %606 = vsyncpa [#allocation6], 1 }

</bundles_post_ra>
